<compile_context>
chip_gen: v7x
topology: tpu7x:2x2x1
jax: 0.10.0
libtpu: 0.0.40
codegen_flags: <defaults>
</compile_context>

<pallas_src>
import functools

import jax
import jax.numpy as jnp
from jax import lax
from jax.experimental import pallas as pl
from jax.experimental.pallas import tpu as pltpu


# ----------------------------- kernel body ----------------------------------


def _conv_kernel(x_ref, wb_ref, o_ref, *, KH, SH, TH):
    """One (batch, H-tile) grid step.

    x_ref : (1, Hp_eff, Wp*Cin)        padded input slab, lane-dense, resident per batch
    wb_ref: (KH*Wp*Cin, Wo*Cout)       banded weights (KH folded into K), grid-resident
    o_ref : (1, TH, Wo*Cout)           lane-dense output tile
    """
    t = pl.program_id(1)
    row0 = t * (TH * SH)
    if (TH * SH) % 8 == 0:
        row0 = pl.multiple_of(row0, 8)  # aligned sublane start for the tile base

    # Ref-side narrow loads of the KH shifted row views; lane-concat into the
    # single matmul LHS (TH, KH*Wp*Cin).
    views = []
    for kh in range(KH):
        if SH == 1:
            views.append(x_ref[0, pl.ds(row0 + kh, TH), :])
        else:
            views.append(x_ref[0, pl.ds(row0 + kh, TH, stride=SH), :])
    lhs = views[0] if KH == 1 else jnp.concatenate(views, axis=-1)

    acc = jnp.dot(lhs, wb_ref[...], preferred_element_type=jnp.float32)
    o_ref[0] = acc.astype(o_ref.dtype)


# ----------------------------- helpers ---------------------------------------


def _pair(v):
    return (v, v) if isinstance(v, int) else tuple(v)


def _round_up(x, m):
    return ((x + m - 1) // m) * m


def _pick_th(Ho, cap=128):
    """Output rows per tile: multiple of 8, <= cap, minimizing Ho padding."""
    nt = max(1, pl.cdiv(Ho, cap))
    return min(_round_up(pl.cdiv(Ho, nt), 8), _round_up(Ho, 8))


def _vmem_capacity_bytes():
    try:
        return int(pltpu.get_tpu_info().vmem_capacity_bytes)
    except Exception:
        return 64 * 1024 * 1024  # conservative (v7x per-TC) fallback


def _band_weights(w_oihw, Wp, Wo, SW, dtype):
    """Banded weight with KH folded into the contraction dim.

    Wb[kh*Wp*Cin + w_in*Cin + ci, wo*Cout + co] = w[co, ci, kh, w_in - wo*SW]
    (zero outside the band).  Built once at module-init time.
    """
    Cout, Cin, KH, KW = w_oihw.shape
    w_hwio = jnp.transpose(w_oihw, (2, 3, 1, 0)).astype(dtype)   # (KH, KW, Cin, Cout)
    w_in = jnp.arange(Wp)[:, None, None]
    wo = jnp.arange(Wo)[None, :, None]
    kw = jnp.arange(KW)[None, None, :]
    sel = (w_in == wo * SW + kw).astype(dtype)                   # (Wp, Wo, KW)
    wb = jnp.einsum("xok,hkic->hxioc", sel, w_hwio)              # (KH, Wp, Cin, Wo, Cout)
    return wb.reshape(KH * Wp * Cin, Wo * Cout)


# ----------------------------- module factory ---------------------------------


def make_basic_conv2d(w_oihw, stride, padding, input_hw, *, compute_dtype=jnp.float32):
    """Build a jitted forward equivalent to BasicConv2d (Conv2d, bias=False).

    The banded weight and all static tiling decisions are made once here
    ("module init"); the returned callable only does layout plumbing + the
    Pallas kernel.
    """
    SH, SW = _pair(stride)
    PH, PW = _pair(padding)
    H, W = input_hw
    Cout, Cin, KH, KW = w_oihw.shape

    Ho = (H + 2 * PH - KH) // SH + 1
    Wo = (W + 2 * PW - KW) // SW + 1
    Hp, Wp = H + 2 * PH, W + 2 * PW
    WpCin, WoCout = Wp * Cin, Wo * Cout

    # H tiling: TH ~ 128 (multiple of 8); pad Ho to NT*TH, crop after.
    TH = _pick_th(Ho)
    NT = pl.cdiv(Ho, TH)
    Ho_pad = NT * TH
    # Input rows the last tile may touch (incl. halo); pad bottom with zeros.
    Hp_need = (Ho_pad - 1) * SH + KH
    Hp_eff = _round_up(max(Hp, Hp_need), 8)

    # Banded weights, built once (device-resident, closed over by the jit).
    wb = _band_weights(w_oihw, Wp, Wo, SW, compute_dtype)        # (KH*WpCin, WoCout)

    # VMEM budget: double-buffered input slab + wb + output tile, plus the
    # in-kernel LHS/acc values; cap at 75% of queried capacity, floor 32 MiB.
    itemsize = jnp.dtype(compute_dtype).itemsize
    working_set = (
        2 * Hp_eff * WpCin * itemsize            # input slab (double-buffered)
        + 2 * KH * WpCin * WoCout * itemsize     # banded weights
        + 2 * TH * WoCout * itemsize             # output tile
        + TH * (KH * WpCin + WoCout) * 4         # lhs + f32 acc values
    )
    cap = _vmem_capacity_bytes()
    vmem_limit = int(min(int(0.75 * cap), max(32 * 1024 * 1024, 3 * working_set)))

    kernel = functools.partial(_conv_kernel, KH=KH, SH=SH, TH=TH)

    @jax.jit
    def forward(x_nchw):
        N = x_nchw.shape[0]
        assert x_nchw.shape[1:] == (Cin, H, W), x_nchw.shape

        # ---- layout plumbing (fused by XLA under jit) ----
        x_nhwc = jnp.transpose(x_nchw, (0, 2, 3, 1)).astype(compute_dtype)
        x_pad = jnp.pad(
            x_nhwc, ((0, 0), (PH, PH + (Hp_eff - Hp)), (PW, PW), (0, 0))
        )
        xc = x_pad.reshape(N, Hp_eff, WpCin)                     # lane-dense input slab

        out_c = pl.pallas_call(
            kernel,
            out_shape=jax.ShapeDtypeStruct((N, Ho_pad, WoCout), compute_dtype),
            grid_spec=pltpu.PrefetchScalarGridSpec(
                num_scalar_prefetch=0,
                grid=(N, NT),
                in_specs=[
                    # per-batch input slab, resident across the H-tile axis
                    pl.BlockSpec((1, Hp_eff, WpCin), lambda n, t: (n, 0, 0)),
                    # banded weights, resident across the whole grid
                    pl.BlockSpec((KH * WpCin, WoCout), lambda n, t: (0, 0)),
                ],
                out_specs=pl.BlockSpec((1, TH, WoCout), lambda n, t: (n, t, 0)),
            ),
            compiler_params=pltpu.CompilerParams(
                # no cross-step accumulator -> both axes safely parallel
                # (lets v7x's 2 TensorCores share the work even for N == 1)
                dimension_semantics=("parallel", "parallel"),
                vmem_limit_bytes=vmem_limit,
            ),
        )(xc, wb)

        # Crop the Ho pad, lane-dense slab -> NCHW (PyTorch output convention).
        out = out_c[:, :Ho, :].reshape(N, Ho, Wo, Cout)
        return jnp.transpose(out, (0, 3, 1, 2)).astype(x_nchw.dtype)

    return forward


def basic_conv2d(x_nchw, w_oihw, stride, padding):
    """One-shot convenience wrapper (rebuilds the banded weights each call)."""
    fwd = make_basic_conv2d(w_oihw, stride, padding, x_nchw.shape[2:])
    return fwd(x_nchw)


# ----------------------------- demo / check ----------------------------------


if __name__ == "__main__":
    # BasicConv2d(in_channels=4, out_channels=8, kernel_size=3, stride=1, padding=1)
    N, Cin, H, W = 2, 4, 16, 16
    Cout, KH, KW = 8, 3, 3
    stride, padding = 1, 1

    key = jax.random.PRNGKey(0)
    kx, kw = jax.random.split(key)
    x = jax.random.normal(kx, (N, Cin, H, W), dtype=jnp.float32)
    # deterministic synthetic Conv2d weights (OIHW), bias=False
    w = jax.random.normal(kw, (Cout, Cin, KH, KW), dtype=jnp.float32) * 0.1

    forward = make_basic_conv2d(w, stride, padding, (H, W))
    out = forward(x)
    out = jax.block_until_ready(out)

    # Cross-check against XLA's native convolution (same semantics as nn.Conv2d)
    ref = lax.conv_general_dilated(
        x, w, window_strides=(stride, stride),
        padding=((padding, padding), (padding, padding)),
        dimension_numbers=("NCHW", "OIHW", "NCHW"),
    )
    assert out.shape == (N, Cout, H, W), out.shape
    assert jnp.allclose(out, ref, atol=1e-4, rtol=1e-4), "mismatch vs reference conv"

    print("KERNEL_OK")
</pallas_src>

<mosaic_0001>
module attributes {stable_mosaic.version = 11 : i64} {
  func.func @_conv_kernel(%arg0: i32, %arg1: i32, %arg2: memref<1x24x72xf32, #tpu.memory_space<vmem>>, %arg3: memref<216x128xf32, #tpu.memory_space<vmem>>, %arg4: memref<1x16x128xf32, #tpu.memory_space<vmem>>) attributes {dimension_semantics = [#tpu.dimension_semantics<parallel>, #tpu.dimension_semantics<parallel>], iteration_bounds = array<i64: 2, 1>, scalar_prefetch = 0 : i64, scratch_operands = 0 : i64, tpu.core_type = #tpu.core_type<tc>, window_params = [{transform_indices = @transform_0, window_bounds = array<i64: 1, 24, 72>}, {pipeline_mode = #tpu.pipeline_mode<synchronous>, transform_indices = @transform_1, window_bounds = array<i64: 216, 128>}, {transform_indices = @transform_2, window_bounds = array<i64: 1, 16, 128>}]} {
    %c16_i32 = arith.constant 16 : i32
    %0 = arith.muli %arg1, %c16_i32 : i32
    %1 = tpu.assume_multiple %0, 8 : i32
    %c0_i32 = arith.constant 0 : i32
    %2 = arith.addi %1, %c0_i32 : i32
    %c0 = arith.constant 0 : index
    %3 = arith.index_cast %2 : i32 to index
    %c0_0 = arith.constant 0 : index
    %4 = vector.load %arg2[%c0, %3, %c0_0] : memref<1x24x72xf32, #tpu.memory_space<vmem>>, vector<1x16x72xf32>
    %5 = vector.shape_cast %4 : vector<1x16x72xf32> to vector<16x72xf32>
    %c1_i32 = arith.constant 1 : i32
    %6 = arith.addi %1, %c1_i32 : i32
    %c0_1 = arith.constant 0 : index
    %7 = arith.index_cast %6 : i32 to index
    %c0_2 = arith.constant 0 : index
    %8 = vector.load %arg2[%c0_1, %7, %c0_2] : memref<1x24x72xf32, #tpu.memory_space<vmem>>, vector<1x16x72xf32>
    %9 = vector.shape_cast %8 : vector<1x16x72xf32> to vector<16x72xf32>
    %c2_i32 = arith.constant 2 : i32
    %10 = arith.addi %1, %c2_i32 : i32
    %c0_3 = arith.constant 0 : index
    %11 = arith.index_cast %10 : i32 to index
    %c0_4 = arith.constant 0 : index
    %12 = vector.load %arg2[%c0_3, %11, %c0_4] : memref<1x24x72xf32, #tpu.memory_space<vmem>>, vector<1x16x72xf32>
    %13 = vector.shape_cast %12 : vector<1x16x72xf32> to vector<16x72xf32>
    %14 = tpu.concatenate %5, %9, %13 in 1 : vector<16x72xf32>, vector<16x72xf32>, vector<16x72xf32> -> vector<16x216xf32>
    %c0_5 = arith.constant 0 : index
    %c0_6 = arith.constant 0 : index
    %15 = vector.load %arg3[%c0_5, %c0_6] : memref<216x128xf32, #tpu.memory_space<vmem>>, vector<216x128xf32>
    %cst = arith.constant dense<0.000000e+00> : vector<16x128xf32>
    %16 = tpu.matmul %14, %15, %cst {dimension_numbers = #tpu.dot_dimension_numbers<[1], [0], [0], [1], [0, 0, 1, 1], [], []>} : vector<16x216xf32>, vector<216x128xf32>, vector<16x128xf32> -> vector<16x128xf32>
    %c0_7 = arith.constant 0 : index
    %c0_8 = arith.constant 0 : index
    %c0_9 = arith.constant 0 : index
    %17 = vector.load %arg4[%c0_7, %c0_8, %c0_9] : memref<1x16x128xf32, #tpu.memory_space<vmem>>, vector<1x16x128xf32>
    %18 = vector.shape_cast %17 : vector<1x16x128xf32> to vector<16x128xf32>
    %19 = vector.shape_cast %16 : vector<16x128xf32> to vector<1x16x128xf32>
    tpu.vector_store %arg4[%c0_7, %c0_8, %c0_9], %19 {strides = array<i32>} : memref<1x16x128xf32, #tpu.memory_space<vmem>>, vector<1x16x128xf32>,
    return
  }
  func.func @transform_0(%arg0: i32, %arg1: i32) -> (i32, i32, i32) {
    %c0_i32 = arith.constant 0 : i32
    %c0_i32_0 = arith.constant 0 : i32
    %c0_i32_1 = arith.constant 0 : i32
    return %arg0, %c0_i32, %c0_i32_0 : i32, i32, i32
  }
  func.func @transform_1(%arg0: i32, %arg1: i32) -> (i32, i32) {
    %c0_i32 = arith.constant 0 : i32
    %c0_i32_0 = arith.constant 0 : i32
    %c0_i32_1 = arith.constant 0 : i32
    return %c0_i32, %c0_i32_0 : i32, i32
  }
  func.func @transform_2(%arg0: i32, %arg1: i32) -> (i32, i32, i32) {
    %c0_i32 = arith.constant 0 : i32
    %c0_i32_0 = arith.constant 0 : i32
    return %arg0, %arg1, %c0_i32 : i32, i32, i32
  }
}

</mosaic_0001>

<bundles_post_ra>
// kernel: forward.1
= control target key start
LH: loop header
LB: loop body
LE: loop exit
PB: predicated region body
PF: predicated region fallthrough
CT: control target
= control target key end

     0   :  { %s557_s9 = smov 0   ;;  %s559_s10 = smov 0   ;;  %s709_s0 = inlined_call_operand.vmem [shape: f32[2,24,72], index: 0, kind: input, shape index: {}]   ;;  %s710_s1 = inlined_call_operand.vmem [shape: f32[216,128], index: 1, kind: input, shape index: {}]   ;;  %s711_s2 = inlined_call_operand.vmem [shape: f32[2,16,128], index: 2, kind: output, shape index: {}]  }
   0x1   :  { %s561_s11 = smov 0  }
   0x2 LB: > { %s24_s12 = sadd.s32 1, %s532_s10  ;;  %p405_p0 = scmp.ge.s32.totalorder %s536_s11, 1  ;;  %s536_s11 = sphi %s561_s11, %s12_s11   ;;  %s532_s10 = sphi %s559_s10, %s713_s10   ;;  %s528_s9 = sphi %s557_s9, %s712_s9  }
   0x3   : > { %p26_p1 = scmp.ge.s32.totalorder %s24_s12, 2  ;;  %p126_p2 = scmp.lt.s32.totalorder %s536_s11, 3 }
   0x5   : > { %s715_s12 = smov (%p26_p1, %s24_s12), 0  ;;  %p127_p3 = pnand %p405_p0, %p126_p2 }
   0x6   : > { %p152_p4 = scmp.lt.s32.totalorder (!%p127_p3), %s528_s9, 1  ;;  %v201_v0 = vld [vmem:[%s710_s1] sm:$0xff] (!%p127_p3)  ;;  %v202_v1 = vld [vmem:[%s710_s1 + $0x8] sm:$0xff] (!%p127_p3)  ;;  %v203_v2 = vld [vmem:[%s710_s1 + $0x10] sm:$0xff] (!%p127_p3)  ;;  %v538_v3 = vmov (!%p127_p3), 0.0|0.0   ;;  %s539_s29 = smov (!%p127_p3), 16  }
   0x7   : > { %130 = sbr.rel (%p127_p3) target bundleno = 354 (0x162), region = 28  ;;  %418 = vmatprep.subr.bf16.mxu0 (!%p127_p3), %v538_v3  ;;  %v419_v4 = vpack.c.bf16 (!%p127_p3), %v202_v1, %v201_v0  ;;  %457 = vmatprep.subr.bf16.mxu1 (!%p127_p3), %v538_v3  ;;  %v204_v5 = vld [vmem:[%s710_s1 + $0x18] sm:$0xff] (!%p127_p3)  ;;  %v205_v7 = vld [vmem:[%s710_s1 + $0x20] sm:$0xff] (!%p127_p3)  ;;  %v206_v8 = vld [vmem:[%s710_s1 + $0x28] sm:$0xff] (!%p127_p3)  ;;  %s540_s30 = smov (!%p127_p3), 72   ;;  %v541_v44 = vmov (!%p127_p3), 0.0  }
   0x8   : > { %v422_v6 = vpack.c.bf16 (!%p127_p3), %v204_v5, %v203_v2  ;;  %v425_v11 = vpack.c.bf16 (!%p127_p3), %v206_v8, %v205_v7  ;;  %v207_v12 = vld [vmem:[%s710_s1 + $0x30] sm:$0xff] (!%p127_p3)  ;;  %v208_v13 = vld [vmem:[%s710_s1 + $0x38] sm:$0xff] (!%p127_p3)  ;;  %v209_v17 = vld [vmem:[%s710_s1 + $0x40] sm:$0xff] (!%p127_p3)  ;;  %vm198_vm0 = vcmask (!%p127_p3), 130048   ;;  %vm195_vm1 = vcmask (!%p127_p3), 588800  }
   0x9   : > { %420 = vmatpush1.bf16.msra.mxu0 (!%p127_p3), %v419_v4  ;;  %471 = vmatpush1.bf16.msra.mxu1 (!%p127_p3), %v419_v4  ;;  %v428_v16 = vpack.c.bf16 (!%p127_p3), %v208_v13, %v207_v12  ;;  %v210_v18 = vld [vmem:[%s710_s1 + $0x48] sm:$0xff] (!%p127_p3)  ;;  %v211_v20 = vld [vmem:[%s710_s1 + $0x50] sm:$0xff] (!%p127_p3)  ;;  %v212_v21 = vld [vmem:[%s710_s1 + $0x58] sm:$0xff] (!%p127_p3)  ;;  %vm228_vm2 = vcmask (!%p127_p3), 719872  }
   0xa   : > { %421 = vmatprep.subr.bf16.mxu0 (!%p127_p3), %v538_v3  ;;  %458 = vmatprep.subr.bf16.mxu1 (!%p127_p3), %v538_v3  ;;  %v431_v19 = vpack.c.bf16 (!%p127_p3), %v210_v18, %v209_v17  ;;  %v434_v22 = vpack.c.bf16 (!%p127_p3), %v212_v21, %v211_v20  ;;  %v213_v23 = vld [vmem:[%s710_s1 + $0x60] sm:$0xff] (!%p127_p3)  ;;  %v214_v24 = vld [vmem:[%s710_s1 + $0x68] sm:$0xff] (!%p127_p3)  ;;  %v215_v26 = vld [vmem:[%s710_s1 + $0x70] sm:$0xff] (!%p127_p3) }
   0xb   : > { %v437_v25 = vpack.c.bf16 (!%p127_p3), %v214_v24, %v213_v23  ;;  %v216_v27 = vld [vmem:[%s710_s1 + $0x78] sm:$0xff] (!%p127_p3)  ;;  %v217_v29 = vld [vmem:[%s710_s1 + $0x80] sm:$0xff] (!%p127_p3)  ;;  %v218_v30 = vld [vmem:[%s710_s1 + $0x88] sm:$0xff] (!%p127_p3) }
   0xc   : > { %v440_v28 = vpack.c.bf16 (!%p127_p3), %v216_v27, %v215_v26  ;;  %v443_v31 = vpack.c.bf16 (!%p127_p3), %v218_v30, %v217_v29  ;;  %v219_v32 = vld [vmem:[%s710_s1 + $0x90] sm:$0xff] (!%p127_p3)  ;;  %v220_v33 = vld [vmem:[%s710_s1 + $0x98] sm:$0xff] (!%p127_p3)  ;;  %v221_v35 = vld [vmem:[%s710_s1 + $0xa0] sm:$0xff] (!%p127_p3) }
   0xd   : > { %423 = vmatpush1.bf16.msra.mxu0 (!%p127_p3), %v422_v6  ;;  %472 = vmatpush1.bf16.msra.mxu1 (!%p127_p3), %v422_v6  ;;  %v446_v34 = vpack.c.bf16 (!%p127_p3), %v220_v33, %v219_v32  ;;  %v222_v36 = vld [vmem:[%s710_s1 + $0xa8] sm:$0xff] (!%p127_p3)  ;;  %v223_v38 = vld [vmem:[%s710_s1 + $0xb0] sm:$0xff] (!%p127_p3)  ;;  %v224_v39 = vld [vmem:[%s710_s1 + $0xb8] sm:$0xff] (!%p127_p3) }
   0xe   : > { %s717_s9 = smov (!%p152_p4, %s528_s9), 1  ;;  %424 = vmatprep.subr.bf16.mxu0 %v538_v3  ;;  %459 = vmatprep.subr.bf16.mxu1 %v538_v3  ;;  %v449_v37 = vpack.c.bf16 %v222_v36, %v221_v35  ;;  %v452_v40 = vpack.c.bf16 %v224_v39, %v223_v38  ;;  %v225_v41 = vld [vmem:[%s710_s1 + $0xc0] sm:$0xff]  ;;  %v226_v42 = vld [vmem:[%s710_s1 + $0xc8] sm:$0xff]  ;;  %v227_v45 = vld [vmem:[%s710_s1 + $0xd0] sm:$0xff] }
   0xf   : > { %s485_s21 = smul.u32 24, %s717_s9  ;;  %v455_v43 = vpack.c.bf16 %v226_v42, %v225_v41  ;;  %s417_s26 = sshll.u32 %s717_s9, 4 }
  0x11   : > { %s603_s28 = scalar_lea.vmem %s709_s0, %s485_s21  ;;  %426 = vmatpush1.bf16.msra.mxu0 %v425_v11  ;;  %473 = vmatpush1.bf16.msra.mxu1 %v425_v11 }
  0x12   : > { %v411_v9 = vld [vmem:[%s603_s28 + $0x2] sm:$0xff]  ;;  %v412_v14 = vld [vmem:[%s603_s28 + $0xa] sm:$0xff]  ;;  %427 = vmatprep.subr.bf16.mxu0 %v538_v3  ;;  %460 = vmatprep.subr.bf16.mxu1 %v538_v3 }
  0x13   : > { %v409_v10 = vld [vmem:[%s603_s28 + $0x1] sm:$0xff]  ;;  %189 = vrot.lane.b32.xlu1 %v411_v9, %s539_s29  ;;  %v410_v15 = vld [vmem:[%s603_s28 + $0x9] sm:$0xff] }
  0x14   : > { %181 = vrot.lane.b32.xlu0 %v409_v10, %s540_s30  ;;  %v169_v46 = vld [vmem:[%s603_s28] sm:$0xff]  ;;  %v170_v51 = vld [vmem:[%s603_s28 + $0x8] sm:$0xff] }
  0x15   : > { %429 = vmatpush1.bf16.msra.mxu0 %v428_v16  ;;  %474 = vmatpush1.bf16.msra.mxu1 %v428_v16 }
  0x16   : > { %430 = vmatprep.subr.bf16.mxu0 %v538_v3  ;;  %461 = vmatprep.subr.bf16.mxu1 %v538_v3 }
  0x17   : > { %191 = vrot.lane.b32.xlu1 %v412_v14, %s539_s29 }
  0x18   : > { %183 = vrot.lane.b32.xlu0 %v410_v15, %s540_s30  ;;  %s165_s30 = scalar_lea.vmem %s711_s2, %s417_s26 }
  0x19   : > { %432 = vmatpush1.bf16.msra.mxu0 %v431_v19  ;;  %475 = vmatpush1.bf16.msra.mxu1 %v431_v19 }
  0x1a   : > { %433 = vmatprep.subr.bf16.mxu0 %v538_v3  ;;  %462 = vmatprep.subr.bf16.mxu1 %v538_v3 }
  0x1d   : > { %435 = vmatpush1.bf16.msra.mxu0 %v434_v22  ;;  %476 = vmatpush1.bf16.msra.mxu1 %v434_v22 }
  0x1e   : > { %436 = vmatprep.subr.bf16.mxu0 %v538_v3  ;;  %463 = vmatprep.subr.bf16.mxu1 %v538_v3 }
  0x21   : > { %438 = vmatpush1.bf16.msra.mxu0 %v437_v25  ;;  %477 = vmatpush1.bf16.msra.mxu1 %v437_v25 }
  0x22   : > { %439 = vmatprep.subr.bf16.mxu0 %v538_v3  ;;  %464 = vmatprep.subr.bf16.mxu1 %v538_v3 }
  0x25   : > { %441 = vmatpush1.bf16.msra.mxu0 %v440_v28  ;;  %478 = vmatpush1.bf16.msra.mxu1 %v440_v28 }
  0x26   : > { %442 = vmatprep.subr.bf16.mxu0 %v538_v3  ;;  %465 = vmatprep.subr.bf16.mxu1 %v538_v3 }
  0x29   : > { %444 = vmatpush1.bf16.msra.mxu0 %v443_v31  ;;  %479 = vmatpush1.bf16.msra.mxu1 %v443_v31 }
  0x2a   : > { %445 = vmatprep.subr.bf16.mxu0 %v538_v3  ;;  %466 = vmatprep.subr.bf16.mxu1 %v538_v3 }
  0x2d   : > { %447 = vmatpush1.bf16.msra.mxu0 %v446_v34  ;;  %480 = vmatpush1.bf16.msra.mxu1 %v446_v34 }
  0x2e   : > { %448 = vmatprep.subr.bf16.mxu0 %v538_v3  ;;  %467 = vmatprep.subr.bf16.mxu1 %v538_v3 }
  0x31   : > { %450 = vmatpush1.bf16.msra.mxu0 %v449_v37  ;;  %481 = vmatpush1.bf16.msra.mxu1 %v449_v37 }
  0x32   : > { %451 = vmatprep.subr.bf16.mxu0 %v538_v3  ;;  %468 = vmatprep.subr.bf16.mxu1 %v538_v3 }
  0x35   : > { %453 = vmatpush1.bf16.msra.mxu0 %v452_v40  ;;  %482 = vmatpush1.bf16.msra.mxu1 %v452_v40 }
  0x36   : > { %454 = vmatprep.subr.bf16.mxu0 %v538_v3  ;;  %469 = vmatprep.subr.bf16.mxu1 %v538_v3 }
  0x39   : > { %456 = vmatpush1.bf16.msra.mxu0 %v455_v43  ;;  %483 = vmatpush1.bf16.msra.mxu1 %v455_v43 }
  0x3a   : > { %287 = vmatprep.subr.mxu0 %v541_v44  ;;  %470 = vmatprep.subr.mxu1 %v541_v44 }
  0x3d   : > { %288 = vmatpush1.msra.mxu0 %v227_v45  ;;  %484 = vmatpush1.msra.mxu1 %v227_v45 }
  0x85   : > { %v190_v47 = vpop.permute.xlu1 %189 }
  0x86   : > { %v182_v48 = vpop.permute.xlu0 %181 }
  0x87   : > { %v199_v49 = vsel %vm198_vm0, %v182_v48, %v190_v47  ;;  %v196_v50 = vsel %vm195_vm1, %v169_v46, %v182_v48 }
  0x88   : > { %413 = vmatprep.mubr.msk.f32.mxu0 %vm228_vm2, %v199_v49 }
  0x89   : > { %300 = vmatmul.mubr.f32.vlgmr.msra.gmra.mrb[0].mxu0 %v196_v50  ;;  %v192_v52 = vpop.permute.xlu1 %191 }
  0x8a   : > { %v184_v53 = vpop.permute.xlu0 %183 }
  0x8b   : > { %v200_v54 = vsel %vm198_vm0, %v184_v53, %v192_v52  ;;  %v197_v55 = vsel %vm195_vm1, %v170_v51, %v184_v53 }
  0x8c   : > { %414 = vmatprep.mubr.msk.f32.mxu1 %vm228_vm2, %v200_v54 }
  0x8d   : > { %305 = vmatmul.mubr.f32.vlgmr.msra.gmra.mrb[0].mxu1 %v197_v55 }
 0x15c   : > { %v301_v56 = vpop.f32.mrb[0].mxu0 }
 0x15d   : > { %310 = vst [vmem:[%s165_s30] sm:$0xff] %v301_v56  ;;  %v303_v57 = vpop.f32.mrb[1].mxu0 }
 0x160   : > { %v306_v58 = vpop.f32.mrb[0].mxu1 }
 0x161   : > { %311 = vst [vmem:[%s165_s30 + $0x8] sm:$0xff] %v306_v58  ;;  %v308_v59 = vpop.f32.mrb[1].mxu1 }
 0x162 PF: > { %s12_s11 = sadd.s32 1, %s536_s11   ;;  %s712_s9 = smov %s532_s10 }
 0x163   : > { %p9_p5 = scmp.ge.s32.totalorder %s12_s11, 4   ;;  %s713_s10 = smov %s715_s12 }
 0x165   :  { %11 = sbr.rel (!%p9_p5) target bundleno = 2 (0x2), region = 61 }

</bundles_post_ra>
